<compile_context>
chip_gen: v7x
topology: tpu7x:2x2x1
jax: 0.10.0
libtpu: 0.0.40
codegen_flags: <defaults>
</compile_context>

<pallas_src>
import functools

import jax
import jax.numpy as jnp
from jax.experimental import pallas as pl
from jax.experimental.pallas import tpu as pltpu

EPS = 1e-5


def _round_up(v, m):
    return (v + m - 1) // m * m


def _vmem_capacity_bytes():
    """Physical VMEM per TensorCore; assume the tightest chip (v7x) if unknown."""
    try:
        info = pltpu.get_tpu_info()
        for name in ("vmem_capacity_bytes", "vmem_bytes", "vmem_size_bytes"):
            cap = getattr(info, name, None)
            if cap:
                return int(cap)
    except Exception:
        pass
    return 64 << 20


def _plan_budget():
    vmem_cap = _vmem_capacity_bytes()
    # Never request the whole physical VMEM: leave headroom for Mosaic
    # internal scratch / semaphores / DMA bookkeeping (critical on v7x).
    budget = max(vmem_cap - (8 << 20), 24 << 20)
    two_tc = vmem_cap <= (64 << 20)      # heuristic: v7x-style dual TensorCore
    return budget, two_tc


def _slc_kernel_resident(x_ref, w_ref, b_ref, o_ref, *, feat):
    """out = x + (LayerNorm(x) @ W' + b') for one row tile (W' resident).

    gamma/beta are pre-folded into W'/b' on the host, so the kernel only
    computes xhat = (x - mean) * rsqrt(var + eps) before the MXU matmul.
    Padded feature lanes of x are zero => plain sums with a real-F divisor
    give exact LN statistics; zero-padded W'/b' rows/cols keep the matmul
    and residual exact for the real region.
    """
    x = x_ref[...].astype(jnp.float32)                       # [tm, Fp]
    inv_f = jnp.float32(1.0 / feat)
    mean = jnp.sum(x, axis=-1, keepdims=True) * inv_f        # [tm, 1]
    var = jnp.sum(x * x, axis=-1, keepdims=True) * inv_f - mean * mean
    inv_std = jax.lax.rsqrt(var + EPS)
    xhat = ((x - mean) * inv_std).astype(jnp.bfloat16)
    sub = jnp.dot(xhat, w_ref[...],
                  preferred_element_type=jnp.float32) + b_ref[...]
    o_ref[...] = (x + sub).astype(o_ref.dtype)


def _slc_kernel_coltiled(x_ref, w_ref, b_ref, o_ref, xhat_ref, *, feat, tn):
    """Large-F path: W' streamed by output-column tiles (inner grid axis).

    The x row tile stays resident across the column sweep; LN is computed
    once per row tile (at j == 0) into a bf16 VMEM scratch.
    """
    j = pl.program_id(1)

    @pl.when(j == 0)
    def _():
        x = x_ref[...].astype(jnp.float32)
        inv_f = jnp.float32(1.0 / feat)
        mean = jnp.sum(x, axis=-1, keepdims=True) * inv_f
        var = jnp.sum(x * x, axis=-1, keepdims=True) * inv_f - mean * mean
        inv_std = jax.lax.rsqrt(var + EPS)
        xhat_ref[...] = ((x - mean) * inv_std).astype(jnp.bfloat16)

    sub = jnp.dot(xhat_ref[...], w_ref[...],
                  preferred_element_type=jnp.float32) + b_ref[...]
    col0 = pl.multiple_of(j * tn, 128)
    x_cols = x_ref[:, pl.ds(col0, tn)].astype(jnp.float32)
    o_ref[...] = (x_cols + sub).astype(o_ref.dtype)


def sublayer_connect(x, gamma, beta, w, b):
    """x: [N, F] -> x + Linear(LayerNorm(x)).  Lane-dense features, row tiles."""
    n, f = x.shape
    fp = _round_up(f, 128)
    itemsize = x.dtype.itemsize
    pad_f = fp - f

    # Fold the LayerNorm affine into the Linear weights on the host:
    #   (xhat*gamma + beta) @ W + b == xhat @ (gamma[:,None]*W) + (beta @ W + b)
    # (in a real model this is one-time parameter prep, not per-call work).
    w32 = w.astype(jnp.float32)
    w_eff = gamma.reshape(-1, 1).astype(jnp.float32) * w32
    b_eff = beta.reshape(1, -1).astype(jnp.float32) @ w32 + b.astype(jnp.float32)

    if pad_f:  # lane-dense features; padded lanes are mathematically inert
        x_in = jnp.pad(x, ((0, 0), (0, pad_f)))
        w_eff = jnp.pad(w_eff, ((0, pad_f), (0, pad_f)))
        b_eff = jnp.pad(b_eff, ((0, 0), (0, pad_f)))
    else:      # no wrapper-side copy of x at all (rows are never padded)
        x_in = x
    w_eff = w_eff.astype(jnp.bfloat16)

    budget, two_tc = _plan_budget()
    n8 = _round_up(max(n, 1), 8)
    w_bytes = fp * fp * 2                 # bf16 W', single-buffered (invariant)

    tm_probe = min(256, n8)
    resident_fits = (w_bytes + 4 * tm_probe * fp * itemsize
                     + 3 * tm_probe * fp * 4 + (4 << 20)) <= budget

    if resident_fits:
        # ---------------- resident-W path: 1-D grid over row tiles ----------
        tm = min(512 if fp <= 1024 else 256, n8)
        per_row = 4 * fp * itemsize + 3 * fp * 4   # x/out dbl-buffers + temps
        max_tm = (budget - w_bytes - (4 << 20)) // per_row
        tm = max(8, min(tm, (int(max_tm) // 8) * 8))
        # Megacore: only split a single-step grid on dual-TC chips, and only
        # when each half still fills the 256-wide MXU.
        if two_tc and n8 >= 512 and pl.cdiv(n, tm) < 2:
            tm = max(256, _round_up(pl.cdiv(n8, 2), 256))

        need = w_bytes + tm * per_row + 2 * fp * 4 + (4 << 20)
        vmem_limit = int(min(max(need, 16 << 20), budget))
        cost = pl.CostEstimate(
            flops=2 * n * fp * fp, transcendentals=0,
            bytes_accessed=2 * n * fp * itemsize + fp * fp * 2 + fp * 4)

        def call(single_buffer):
            if single_buffer:
                # Grid-invariant operands: double-buffering a constant block
                # only wastes VMEM -> single-buffer them.
                inv_spec = lambda shp, im: pl.BlockSpec(
                    shp, im, pipeline_mode=pl.Buffered(1))
            else:
                inv_spec = pl.BlockSpec
            return pl.pallas_call(
                functools.partial(_slc_kernel_resident, feat=f),
                out_shape=jax.ShapeDtypeStruct((n, fp), x.dtype),
                grid=(pl.cdiv(n, tm),),
                in_specs=[
                    pl.BlockSpec((tm, fp), lambda i: (i, 0)),   # x row tile
                    inv_spec((fp, fp), lambda i: (0, 0)),       # folded W (resident)
                    inv_spec((1, fp), lambda i: (0, 0)),        # folded bias
                ],
                out_specs=pl.BlockSpec((tm, fp), lambda i: (i, 0)),
                compiler_params=pltpu.CompilerParams(
                    dimension_semantics=("parallel",),
                    vmem_limit_bytes=vmem_limit),
                cost_estimate=cost,
            )(x_in, w_eff, b_eff)

        try:
            out = call(True)
        except Exception:
            out = call(False)    # fall back if pipeline_mode/Buffered(1) unsupported
    else:
        # -------- column-streamed path (large F, e.g. F >= ~4k on v7x) -------
        tm = min(256, n8)
        tn = 128
        for cand in (2048, 1024, 512, 256, 128):
            if cand > fp or fp % cand:
                continue
            need = (2 * fp * cand * 2 + 2 * tm * fp * itemsize + tm * fp * 2
                    + 2 * tm * cand * itemsize + 3 * tm * cand * 4 + (4 << 20))
            if need <= budget:
                tn = cand
                break
        # TODO(synk): if even (Fp x 128) W tiles + the row tile exceed VMEM,
        # add a K-reduction grid axis as well.
        need = (2 * fp * tn * 2 + 2 * tm * fp * itemsize + tm * fp * 2
                + 2 * tm * tn * itemsize + 3 * tm * tn * 4 + (4 << 20))
        vmem_limit = int(min(max(need, 16 << 20), budget))
        cost = pl.CostEstimate(
            flops=2 * n * fp * fp, transcendentals=0,
            bytes_accessed=(2 * n * fp * itemsize
                            + pl.cdiv(n, tm) * fp * fp * 2 + fp * 4))
        out = pl.pallas_call(
            functools.partial(_slc_kernel_coltiled, feat=f, tn=tn),
            out_shape=jax.ShapeDtypeStruct((n, fp), x.dtype),
            grid=(pl.cdiv(n, tm), fp // tn),
            in_specs=[
                pl.BlockSpec((tm, fp), lambda i, j: (i, 0)),    # x (resident over j)
                pl.BlockSpec((fp, tn), lambda i, j: (0, j)),    # W column stream
                pl.BlockSpec((1, tn), lambda i, j: (0, j)),     # bias column stream
            ],
            out_specs=pl.BlockSpec((tm, tn), lambda i, j: (i, j)),
            scratch_shapes=[pltpu.VMEM((tm, fp), jnp.bfloat16)],
            compiler_params=pltpu.CompilerParams(
                dimension_semantics=("parallel", "arbitrary"),
                vmem_limit_bytes=vmem_limit),
            cost_estimate=cost,
        )(x_in, w_eff, b_eff)

    return out[:, :f] if pad_f else out


def _reference(x, gamma, beta, w, b):
    mean = jnp.mean(x, axis=-1, keepdims=True)
    var = jnp.mean((x - mean) ** 2, axis=-1, keepdims=True)
    normed = (x - mean) / jnp.sqrt(var + EPS) * gamma + beta
    return x + normed @ w + b


if __name__ == "__main__":
    batch, seq, features = 2, 8, 32

    key = jax.random.PRNGKey(0)
    kx, kw, kb = jax.random.split(key, 3)

    x3 = jax.random.normal(kx, (batch, seq, features), dtype=jnp.float32)

    # LayerNorm params: PyTorch default init (weight=1, bias=0).
    gamma = jnp.ones((1, features), dtype=jnp.float32)
    beta = jnp.zeros((1, features), dtype=jnp.float32)

    # Deterministic "sublayer" = Linear(features, features).
    w = (jax.random.normal(kw, (features, features), dtype=jnp.float32)
         / jnp.sqrt(features))
    b = jax.random.normal(kb, (1, features), dtype=jnp.float32) * 0.01

    x2 = x3.reshape(batch * seq, features)               # flatten tokens to rows
    out = sublayer_connect(x2, gamma, beta, w, b)
    out = jax.block_until_ready(out)

    ref = _reference(x2, gamma, beta, w, b)
    # bf16 MXU inputs (f32 accumulation) => ~1e-2 relative rounding budget.
    assert jnp.allclose(out, ref, atol=2e-2, rtol=2e-2), "mismatch vs reference"

    out3 = out.reshape(batch, seq, features)             # restore [B, S, F]
    jax.block_until_ready(out3)
    print("KERNEL_OK")
</pallas_src>

<mosaic_0001>
module attributes {stable_mosaic.version = 11 : i64} {
  func.func @_slc_kernel_resident(%arg0: i32, %arg1: memref<16x128xf32, #tpu.memory_space<vmem>>, %arg2: memref<128x128xbf16, #tpu.memory_space<vmem>>, %arg3: memref<1x128xf32, #tpu.memory_space<vmem>>, %arg4: memref<16x128xf32, #tpu.memory_space<vmem>>) attributes {dimension_semantics = [#tpu.dimension_semantics<parallel>], iteration_bounds = array<i64: 1>, scalar_prefetch = 0 : i64, scratch_operands = 0 : i64, tpu.core_type = #tpu.core_type<tc>, window_params = [{transform_indices = @transform_0, window_bounds = array<i64: 16, 128>}, {pipeline_mode = #tpu.pipeline_mode<synchronous>, transform_indices = @transform_1, window_bounds = array<i64: 128, 128>}, {pipeline_mode = #tpu.pipeline_mode<synchronous>, transform_indices = @transform_2, window_bounds = array<i64: 1, 128>}, {transform_indices = @transform_3, window_bounds = array<i64: 16, 128>}]} {
    %c0 = arith.constant 0 : index
    %c0_0 = arith.constant 0 : index
    %0 = vector.load %arg1[%c0, %c0_0] : memref<16x128xf32, #tpu.memory_space<vmem>>, vector<16x128xf32>
    %cst = arith.constant dense<0.000000e+00> : vector<16xf32>
    %1 = vector.multi_reduction <add>, %0, %cst [1] : vector<16x128xf32> to vector<16xf32>
    %2 = vector.shape_cast %1 : vector<16xf32> to vector<16x1xf32>
    %cst_1 = arith.constant 3.125000e-02 : f32
    %3 = vector.broadcast %cst_1 : f32 to vector<16x1xf32>
    %4 = arith.mulf %2, %3 : vector<16x1xf32>
    %5 = arith.mulf %0, %0 : vector<16x128xf32>
    %cst_2 = arith.constant dense<0.000000e+00> : vector<16xf32>
    %6 = vector.multi_reduction <add>, %5, %cst_2 [1] : vector<16x128xf32> to vector<16xf32>
    %7 = vector.shape_cast %6 : vector<16xf32> to vector<16x1xf32>
    %cst_3 = arith.constant 3.125000e-02 : f32
    %8 = vector.broadcast %cst_3 : f32 to vector<16x1xf32>
    %9 = arith.mulf %7, %8 : vector<16x1xf32>
    %10 = arith.mulf %4, %4 : vector<16x1xf32>
    %11 = arith.subf %9, %10 : vector<16x1xf32>
    %cst_4 = arith.constant 9.99999974E-6 : f32
    %12 = vector.broadcast %cst_4 : f32 to vector<16x1xf32>
    %13 = arith.addf %11, %12 : vector<16x1xf32>
    %14 = math.rsqrt %13 : vector<16x1xf32>
    %15 = vector.broadcast %4 : vector<16x1xf32> to vector<16x128xf32>
    %16 = arith.subf %0, %15 : vector<16x128xf32>
    %17 = vector.broadcast %14 : vector<16x1xf32> to vector<16x128xf32>
    %18 = arith.mulf %16, %17 : vector<16x128xf32>
    %19 = arith.truncf %18 : vector<16x128xf32> to vector<16x128xbf16>
    %c0_5 = arith.constant 0 : index
    %c0_6 = arith.constant 0 : index
    %20 = vector.load %arg2[%c0_5, %c0_6] : memref<128x128xbf16, #tpu.memory_space<vmem>>, vector<128x128xbf16>
    %cst_7 = arith.constant dense<0.000000e+00> : vector<16x128xf32>
    %21 = tpu.matmul %19, %20, %cst_7 {dimension_numbers = #tpu.dot_dimension_numbers<[1], [0], [0], [1], [0, 0, 1, 1], [], []>} : vector<16x128xbf16>, vector<128x128xbf16>, vector<16x128xf32> -> vector<16x128xf32>
    %c0_8 = arith.constant 0 : index
    %c0_9 = arith.constant 0 : index
    %22 = vector.load %arg3[%c0_8, %c0_9] : memref<1x128xf32, #tpu.memory_space<vmem>>, vector<1x128xf32>
    %23 = vector.broadcast %22 : vector<1x128xf32> to vector<16x128xf32>
    %24 = arith.addf %21, %23 : vector<16x128xf32>
    %25 = arith.addf %0, %24 : vector<16x128xf32>
    %c0_10 = arith.constant 0 : index
    %c0_11 = arith.constant 0 : index
    %26 = vector.load %arg4[%c0_10, %c0_11] : memref<16x128xf32, #tpu.memory_space<vmem>>, vector<16x128xf32>
    tpu.vector_store %arg4[%c0_10, %c0_11], %25 {strides = array<i32>} : memref<16x128xf32, #tpu.memory_space<vmem>>, vector<16x128xf32>,
    return
  }
  func.func @transform_0(%arg0: i32) -> (i32, i32) {
    %c0_i32 = arith.constant 0 : i32
    %c0_i32_0 = arith.constant 0 : i32
    return %arg0, %c0_i32 : i32, i32
  }
  func.func @transform_1(%arg0: i32) -> (i32, i32) {
    %c0_i32 = arith.constant 0 : i32
    %c0_i32_0 = arith.constant 0 : i32
    %c0_i32_1 = arith.constant 0 : i32
    return %c0_i32, %c0_i32_0 : i32, i32
  }
  func.func @transform_2(%arg0: i32) -> (i32, i32) {
    %c0_i32 = arith.constant 0 : i32
    %c0_i32_0 = arith.constant 0 : i32
    %c0_i32_1 = arith.constant 0 : i32
    return %c0_i32, %c0_i32_0 : i32, i32
  }
  func.func @transform_3(%arg0: i32) -> (i32, i32) {
    %c0_i32 = arith.constant 0 : i32
    %c0_i32_0 = arith.constant 0 : i32
    return %arg0, %c0_i32 : i32, i32
  }
}

module attributes {stable_mosaic.version = 11 : i64} {
  func.func @_slc_kernel_resident(%arg0: i32, %arg1: memref<16x128xf32, #tpu.memory_space<vmem>>, %arg2: memref<128x128xbf16, #tpu.memory_space<vmem>>, %arg3: memref<1x128xf32, #tpu.memory_space<vmem>>, %arg4: memref<16x128xf32, #tpu.memory_space<vmem>>) attributes {dimension_semantics = [#tpu.dimension_semantics<parallel>], iteration_bounds = array<i64: 1>, scalar_prefetch = 0 : i64, scratch_operands = 0 : i64, tpu.core_type = #tpu.core_type<tc>, window_params = [{transform_indices = @transform_0, window_bounds = array<i64: 16, 128>}, {pipeline_mode = #tpu.pipeline_mode<synchronous>, transform_indices = @transform_1, window_bounds = array<i64: 128, 128>}, {pipeline_mode = #tpu.pipeline_mode<synchronous>, transform_indices = @transform_2, window_bounds = array<i64: 1, 128>}, {transform_indices = @transform_3, window_bounds = array<i64: 16, 128>}]} {
    %c0 = arith.constant 0 : index
    %c0_0 = arith.constant 0 : index
    %0 = vector.load %arg1[%c0, %c0_0] : memref<16x128xf32, #tpu.memory_space<vmem>>, vector<16x128xf32>
    %cst = arith.constant dense<0.000000e+00> : vector<16xf32>
    %1 = vector.multi_reduction <add>, %0, %cst [1] : vector<16x128xf32> to vector<16xf32>
    %2 = vector.shape_cast %1 : vector<16xf32> to vector<16x1xf32>
    %cst_1 = arith.constant 3.125000e-02 : f32
    %3 = vector.broadcast %cst_1 : f32 to vector<16x1xf32>
    %4 = arith.mulf %2, %3 : vector<16x1xf32>
    %5 = arith.mulf %0, %0 : vector<16x128xf32>
    %cst_2 = arith.constant dense<0.000000e+00> : vector<16xf32>
    %6 = vector.multi_reduction <add>, %5, %cst_2 [1] : vector<16x128xf32> to vector<16xf32>
    %7 = vector.shape_cast %6 : vector<16xf32> to vector<16x1xf32>
    %cst_3 = arith.constant 3.125000e-02 : f32
    %8 = vector.broadcast %cst_3 : f32 to vector<16x1xf32>
    %9 = arith.mulf %7, %8 : vector<16x1xf32>
    %10 = arith.mulf %4, %4 : vector<16x1xf32>
    %11 = arith.subf %9, %10 : vector<16x1xf32>
    %cst_4 = arith.constant 9.99999974E-6 : f32
    %12 = vector.broadcast %cst_4 : f32 to vector<16x1xf32>
    %13 = arith.addf %11, %12 : vector<16x1xf32>
    %14 = math.rsqrt %13 : vector<16x1xf32>
    %15 = vector.broadcast %4 : vector<16x1xf32> to vector<16x128xf32>
    %16 = arith.subf %0, %15 : vector<16x128xf32>
    %17 = vector.broadcast %14 : vector<16x1xf32> to vector<16x128xf32>
    %18 = arith.mulf %16, %17 : vector<16x128xf32>
    %19 = arith.truncf %18 : vector<16x128xf32> to vector<16x128xbf16>
    %c0_5 = arith.constant 0 : index
    %c0_6 = arith.constant 0 : index
    %20 = vector.load %arg2[%c0_5, %c0_6] : memref<128x128xbf16, #tpu.memory_space<vmem>>, vector<128x128xbf16>
    %cst_7 = arith.constant dense<0.000000e+00> : vector<16x128xf32>
    %21 = tpu.matmul %19, %20, %cst_7 {dimension_numbers = #tpu.dot_dimension_numbers<[1], [0], [0], [1], [0, 0, 1, 1], [], []>} : vector<16x128xbf16>, vector<128x128xbf16>, vector<16x128xf32> -> vector<16x128xf32>
    %c0_8 = arith.constant 0 : index
    %c0_9 = arith.constant 0 : index
    %22 = vector.load %arg3[%c0_8, %c0_9] : memref<1x128xf32, #tpu.memory_space<vmem>>, vector<1x128xf32>
    %23 = vector.broadcast %22 : vector<1x128xf32> to vector<16x128xf32>
    %24 = arith.addf %21, %23 : vector<16x128xf32>
    %25 = arith.addf %0, %24 : vector<16x128xf32>
    %c0_10 = arith.constant 0 : index
    %c0_11 = arith.constant 0 : index
    %26 = vector.load %arg4[%c0_10, %c0_11] : memref<16x128xf32, #tpu.memory_space<vmem>>, vector<16x128xf32>
    tpu.vector_store %arg4[%c0_10, %c0_11], %25 {strides = array<i32>} : memref<16x128xf32, #tpu.memory_space<vmem>>, vector<16x128xf32>,
    return
  }
  func.func @transform_0(%arg0: i32) -> (i32, i32) {
    %c0_i32 = arith.constant 0 : i32
    %c0_i32_0 = arith.constant 0 : i32
    return %arg0, %c0_i32 : i32, i32
  }
  func.func @transform_1(%arg0: i32) -> (i32, i32) {
    %c0_i32 = arith.constant 0 : i32
    %c0_i32_0 = arith.constant 0 : i32
    %c0_i32_1 = arith.constant 0 : i32
    return %c0_i32, %c0_i32_0 : i32, i32
  }
  func.func @transform_2(%arg0: i32) -> (i32, i32) {
    %c0_i32 = arith.constant 0 : i32
    %c0_i32_0 = arith.constant 0 : i32
    %c0_i32_1 = arith.constant 0 : i32
    return %c0_i32, %c0_i32_0 : i32, i32
  }
  func.func @transform_3(%arg0: i32) -> (i32, i32) {
    %c0_i32 = arith.constant 0 : i32
    %c0_i32_0 = arith.constant 0 : i32
    return %arg0, %c0_i32 : i32, i32
  }
}

</mosaic_0001>

<bundles_post_ra>
// kernel: tpu_custom_call.1
= control target key start
LH: loop header
LB: loop body
LE: loop exit
PB: predicated region body
PF: predicated region fallthrough
CT: control target
= control target key end

     0   :  { %8 = vsyncpa [#allocation3], 0  ;;  %s426_s0 = inlined_call_operand.hbm [shape: f32[16,128], index: 0, kind: input, shape index: {}]   ;;  %s427_s1 = inlined_call_operand.hbm [shape: bf16[128,128], index: 1, kind: input, shape index: {}]   ;;  %s428_s2 = inlined_call_operand.vmem [shape: f32[1,128], index: 2, kind: input, shape index: {}]   ;;  %s429_s3 = inlined_call_operand.hbm [shape: f32[16,128], index: 3, kind: output, shape index: {}]  }
   0x1   :  { %9 = vsyncpa [#allocation6], 0 }
   0x2   :  { %10 = vsyncpa [#allocation4], 0  ;;  %s338_s12 = smov [#allocation2]   ;;  %s266_s16 = scalar_lea.hbm %s426_s0, 256 }
   0x3   :  { %s16_s13 = sshll.u32 %s338_s12, 4  ;;  %p267_p0 = scmp.ne.s32.totalorder %s426_s0, %s266_s16  ;;  %s17_s13 = int_to_ptr.vmem [resolvable:$true] %s16_s13 }
   0x4   :  { %p270_p1 = scmp.lt.u32.totalorder %s266_s16, %s426_s0 }
   0x6   :  { %p272_p2 = pnand %p270_p1, %p267_p0 }
   0x8   :  { %275 = shalt.err (!%p272_p2)
}
   0x9   :  { %s276_s21 = scalar_lea.vmem %s17_s13, 256  ;;  %p281_p4 = scmp.lt.s32.totalorder %s17_s13, %s17_s13 }
   0xa   :  { %p277_p3 = scmp.ne.s32.totalorder %s17_s13, %s276_s21  ;;  %p282_p5 = scmp.lt.s32.totalorder %s276_s21, %s276_s21 }
   0xc   :  { %p283_p6 = por %p282_p5, %p281_p4 }
   0xe   :  { %p284_p7 = pnand %p283_p6, %p277_p3 }
  0x10   :  { %287 = shalt.err (!%p284_p7)
}
  0x11   :  { %s339_s22 = smov 128   ;;  %s340_s23 = smov 8  }
  0x12   :  { %22 = dma.hbm_to_vmem [thread:$0]  %s426_s0, 256, %s17_s13, [#allocation3], %s339_s22, %s339_s22, %s340_s23  }
  0x13   :  { %s341_s26 = smov [#allocation5]   ;;  %s288_s30 = scalar_lea.hbm %s427_s1, 1024 }
  0x14   :  { %s28_s27 = sshll.u32 %s341_s26, 4  ;;  %p289_p8 = scmp.ne.s32.totalorder %s427_s1, %s288_s30  ;;  %s29_s27 = int_to_ptr.vmem [resolvable:$true] %s28_s27 }
  0x15   :  { %p292_p9 = scmp.lt.u32.totalorder %s288_s30, %s427_s1 }
  0x17   :  { %p294_p10 = pnand %p292_p9, %p289_p8 }
  0x19   :  { %297 = shalt.err (!%p294_p10)
}
  0x1a   :  { %s298_s8 = scalar_lea.vmem %s29_s27, 1024  ;;  %p303_p12 = scmp.lt.s32.totalorder %s29_s27, %s29_s27 }
  0x1b   :  { %p299_p11 = scmp.ne.s32.totalorder %s29_s27, %s298_s8  ;;  %p304_p13 = scmp.lt.s32.totalorder %s298_s8, %s298_s8 }
  0x1d   :  { %p305_p0 = por %p304_p13, %p303_p12 }
  0x1f   :  { %p306_p1 = pnand %p305_p0, %p299_p11 }
  0x21   :  { %309 = shalt.err (!%p306_p1)
}
  0x22   :  { %s342_s0 = smov 64   ;;  %s343_s9 = smov 4  }
  0x23   :  { %34 = dma.hbm_to_vmem [thread:$0]  %s427_s1, 1024, %s29_s27, [#allocation6], %s342_s0, %s342_s0, %s343_s9  }
  0x24   :  { %332 = dma.done.wait [#allocation3], 256  }
  0x25   :  { %333 = vsyncadd [#allocation3], 4294967040 }
  0x26   :  { %334 = dma.done.wait [#allocation6], 1024  }
  0x27   :  { %335 = vsyncadd [#allocation6], 4294966272  ;;  %v344_v0 = vmov 0.0   ;;  %v394_v1 = vld [vmem:[#allocation2] sm:$0xff]  ;;  %v396_v2 = vld [vmem:[#allocation2 + $0x8] sm:$0xff]  ;;  %vm345_vm0 = vmmov 0  }
  0x28   :  { %225 = vmatprep.subr.bf16.mxu0 %v344_v0  ;;  %46 = vadd.xlane.f32.xlu0 %v394_v1  ;;  %v52_v3 = vmul.f32 %v394_v1, %v394_v1  ;;  %v254_v4 = vld [vmem:[#allocation5] sm:$0xff]   ;;  %v53_v5 = vmul.f32 %v396_v2, %v396_v2  ;;  %v255_v6 = vld [vmem:[#allocation5 + $0x8] sm:$0xff]   ;;  %v256_v7 = vld [vmem:[#allocation5 + $0x10] sm:$0xff]   ;;  %s346_s13 = smov [#allocation7]  }
  0x29   :  { %226 = vmatpush3.bf16.msra.mxu0 %v254_v4  ;;  %v257_v8 = vld [vmem:[#allocation5 + $0x18] sm:$0xff]   ;;  %v258_v9 = vld [vmem:[#allocation5 + $0x20] sm:$0xff]   ;;  %v259_v10 = vld [vmem:[#allocation5 + $0x28] sm:$0xff]   ;;  %241 = vmatprep.mubr.msk.bf16.mxu0 %vm345_vm0, %v344_v0  ;;  %s194_s14 = sshll.u32 %s346_s13, 4  ;;  %s195_s14 = int_to_ptr.vmem [resolvable:$true] %s194_s14 }
  0x2a   :  { %54 = vadd.xlane.f32.xlu1 %v52_v3  ;;  %227 = vmatprep.subr.bf16.mxu0 %v344_v0  ;;  %v260_v11 = vld [vmem:[#allocation5 + $0x30] sm:$0xff]   ;;  %v261_v12 = vld [vmem:[#allocation5 + $0x38] sm:$0xff]   ;;  %s310_s15 = scalar_lea.vmem %s195_s14, 256  ;;  %p315_p3 = scmp.lt.s32.totalorder %s195_s14, %s195_s14 }
  0x2b   :  { %v207_v34 = vld [vmem:[%s428_s2] ss:$0 sm:$0xff]  ;;  %p311_p2 = scmp.ne.s32.totalorder %s195_s14, %s310_s15  ;;  %p316_p4 = scmp.lt.s32.totalorder %s310_s15, %s310_s15 }
  0x2c   :  { %48 = vadd.xlane.f32.xlu0 %v396_v2 }
  0x2d   :  { %228 = vmatpush3.bf16.msra.mxu0 %v255_v6  ;;  %p317_p5 = por %p316_p4, %p315_p3 }
  0x2e   :  { %56 = vadd.xlane.f32.xlu1 %v53_v5  ;;  %229 = vmatprep.subr.bf16.mxu0 %v344_v0 }
  0x2f   :  { %p318_p6 = pnand %p317_p5, %p311_p2 }
  0x31   :  { %230 = vmatpush3.bf16.msra.mxu0 %v256_v7 }
  0x32   :  { %231 = vmatprep.subr.bf16.mxu0 %v344_v0 }
  0x35   :  { %232 = vmatpush3.bf16.msra.mxu0 %v257_v8 }
  0x36   :  { %233 = vmatprep.subr.bf16.mxu0 %v344_v0 }
  0x39   :  { %234 = vmatpush3.bf16.msra.mxu0 %v258_v9 }
  0x3a   :  { %235 = vmatprep.subr.bf16.mxu0 %v344_v0 }
  0x3d   :  { %236 = vmatpush3.bf16.msra.mxu0 %v259_v10 }
  0x3e   :  { %237 = vmatprep.subr.bf16.mxu0 %v344_v0 }
  0x41   :  { %238 = vmatpush3.bf16.msra.mxu0 %v260_v11 }
  0x42   :  { %239 = vmatprep.subr.bf16.mxu0 %v344_v0 }
  0x45   :  { %240 = vmatpush3.bf16.msra.mxu0 %v261_v12 }
  0xb5   :  { %v47_v13 = vpop.xlane.xlu0 %46 }
  0xb6   :  { %v50_v14 = vmul.f32 0.03125, %v47_v13 }
  0xb7   :  { %v55_v15 = vpop.xlane.xlu1 %54 }
  0xb8   :  { %v60_v16 = vmul.f32 %v50_v14, %v50_v14  ;;  %v58_v17 = vmul.f32 0.03125, %v55_v15  ;;  %v68_v28 = vsub.f32 %v394_v1, %v50_v14 }
  0xb9   :  { %v49_v18 = vpop.xlane.xlu0 %48 }
  0xba   :  { %v62_v19 = vsub.f32 %v58_v17, %v60_v16  ;;  %v51_v20 = vmul.f32 0.03125, %v49_v18 }
  0xbb   :  { %v57_v21 = vpop.xlane.xlu1 %56 }
  0xbc   :  { %v64_v22 = vadd.f32 1e-05, %v62_v19  ;;  %v61_v23 = vmul.f32 %v51_v20, %v51_v20  ;;  %v59_v24 = vmul.f32 0.03125, %v57_v21  ;;  %v69_v29 = vsub.f32 %v396_v2, %v51_v20 }
  0xbe   :  { %v63_v25 = vsub.f32 %v59_v24, %v61_v23  ;;  %262 = vrsqrt.f32 %v64_v22 }
  0xc0   :  { %v65_v26 = vadd.f32 1e-05, %v63_v25 }
  0xc2   :  { %264 = vrsqrt.f32 %v65_v26 }
  0xc8   :  { %v263_v27 = vpop.eup %262 }
  0xc9   :  { %v70_v31 = vmul.f32 %v263_v27, %v68_v28 }
  0xcc   :  { %v265_v30 = vpop.eup %264 }
  0xcd   :  { %v71_v32 = vmul.f32 %v265_v30, %v69_v29 }
  0xcf   :  { %v72_v33 = vpack.c.bf16 %v71_v32, %v70_v31 }
  0xd1   :  { %242 = vmatmul.mubr.bf16.vlgmr.msra.gmra.mrb[0].mxu0 %v72_v33 }
 0x1a4   :  { %v178_v35 = vpop.f32.mrb[0].mxu0 }
 0x1a5   :  { %v179_v36 = vadd.f32 %v207_v34, %v178_v35  ;;  %v243_v37 = vpop.f32.mrb[1].mxu0 }
 0x1a6   :  { %v181_v38 = vpop.f32.mrb[2].mxu0 }
 0x1a7   :  { %v185_v39 = vadd.f32 %v179_v36, %v394_v1  ;;  %v182_v40 = vadd.f32 %v207_v34, %v181_v38  ;;  %v244_v41 = vpop.f32.mrb[3].mxu0 }
 0x1a9   :  { %187 = vst [vmem:[#allocation7] sm:$0xff] %v185_v39  ;;  %v186_v42 = vadd.f32 %v182_v40, %v396_v2 }
 0x1ab   :  { %188 = vst [vmem:[#allocation7 + $0x8] sm:$0xff] %v186_v42 }
 0x1ac   :  { %321 = shalt.err (!%p318_p6)
}
 0x1ad   :  { %s322_s17 = scalar_lea.hbm %s429_s3, 256 }
 0x1ae   :  { %p323_p7 = scmp.ne.s32.totalorder %s429_s3, %s322_s17  ;;  %p326_p8 = scmp.lt.u32.totalorder %s322_s17, %s429_s3 }
 0x1b0   :  { %p328_p9 = pnand %p326_p8, %p323_p7 }
 0x1b2   :  { %331 = shalt.err (!%p328_p9)
}
 0x1b3   :  { %200 = dma.vmem_to_hbm [thread:$0]  %s195_s14, 256, %s429_s3, [#allocation4], %s339_s22, %s339_s22, %s340_s23  }
 0x1b4   :  { %336 = dma.done.wait [#allocation4], 256  }
 0x1b5   :  { %337 = vsyncadd [#allocation4], 4294967040 }
 0x1b6   :  { %204 = vsyncpa [#allocation3], 1 }
 0x1b7   :  { %205 = vsyncpa [#allocation6], 1 }
 0x1b8   :  { %206 = vsyncpa [#allocation4], 1 }

// kernel: tpu_custom_call.1
= control target key start
LH: loop header
LB: loop body
LE: loop exit
PB: predicated region body
PF: predicated region fallthrough
CT: control target
= control target key end

     0   :  { %8 = vsyncpa [#allocation3], 0  ;;  %s426_s0 = inlined_call_operand.hbm [shape: f32[16,128], index: 0, kind: input, shape index: {}]   ;;  %s427_s1 = inlined_call_operand.hbm [shape: bf16[128,128], index: 1, kind: input, shape index: {}]   ;;  %s428_s2 = inlined_call_operand.vmem [shape: f32[1,128], index: 2, kind: input, shape index: {}]   ;;  %s429_s3 = inlined_call_operand.hbm [shape: f32[16,128], index: 3, kind: output, shape index: {}]  }
   0x1   :  { %9 = vsyncpa [#allocation6], 0 }
   0x2   :  { %10 = vsyncpa [#allocation4], 0  ;;  %s338_s12 = smov [#allocation2]   ;;  %s266_s16 = scalar_lea.hbm %s426_s0, 256 }
   0x3   :  { %s16_s13 = sshll.u32 %s338_s12, 4  ;;  %p267_p0 = scmp.ne.s32.totalorder %s426_s0, %s266_s16  ;;  %s17_s13 = int_to_ptr.vmem [resolvable:$true] %s16_s13 }
   0x4   :  { %p270_p1 = scmp.lt.u32.totalorder %s266_s16, %s426_s0 }
   0x6   :  { %p272_p2 = pnand %p270_p1, %p267_p0 }
   0x8   :  { %275 = shalt.err (!%p272_p2)
}
   0x9   :  { %s276_s21 = scalar_lea.vmem %s17_s13, 256  ;;  %p281_p4 = scmp.lt.s32.totalorder %s17_s13, %s17_s13 }
   0xa   :  { %p277_p3 = scmp.ne.s32.totalorder %s17_s13, %s276_s21  ;;  %p282_p5 = scmp.lt.s32.totalorder %s276_s21, %s276_s21 }
   0xc   :  { %p283_p6 = por %p282_p5, %p281_p4 }
   0xe   :  { %p284_p7 = pnand %p283_p6, %p277_p3 }
  0x10   :  { %287 = shalt.err (!%p284_p7)
}
  0x11   :  { %s339_s22 = smov 128   ;;  %s340_s23 = smov 8  }
  0x12   :  { %22 = dma.hbm_to_vmem [thread:$0]  %s426_s0, 256, %s17_s13, [#allocation3], %s339_s22, %s339_s22, %s340_s23  }
  0x13   :  { %s341_s26 = smov [#allocation5]   ;;  %s288_s30 = scalar_lea.hbm %s427_s1, 1024 }
  0x14   :  { %s28_s27 = sshll.u32 %s341_s26, 4  ;;  %p289_p8 = scmp.ne.s32.totalorder %s427_s1, %s288_s30  ;;  %s29_s27 = int_to_ptr.vmem [resolvable:$true] %s28_s27 }
  0x15   :  { %p292_p9 = scmp.lt.u32.totalorder %s288_s30, %s427_s1 }
  0x17   :  { %p294_p10 = pnand %p292_p9, %p289_p8 }
  0x19   :  { %297 = shalt.err (!%p294_p10)
}
  0x1a   :  { %s298_s8 = scalar_lea.vmem %s29_s27, 1024  ;;  %p303_p12 = scmp.lt.s32.totalorder %s29_s27, %s29_s27 }
  0x1b   :  { %p299_p11 = scmp.ne.s32.totalorder %s29_s27, %s298_s8  ;;  %p304_p13 = scmp.lt.s32.totalorder %s298_s8, %s298_s8 }
  0x1d   :  { %p305_p0 = por %p304_p13, %p303_p12 }
  0x1f   :  { %p306_p1 = pnand %p305_p0, %p299_p11 }
  0x21   :  { %309 = shalt.err (!%p306_p1)
}
  0x22   :  { %s342_s0 = smov 64   ;;  %s343_s9 = smov 4  }
  0x23   :  { %34 = dma.hbm_to_vmem [thread:$0]  %s427_s1, 1024, %s29_s27, [#allocation6], %s342_s0, %s342_s0, %s343_s9  }
  0x24   :  { %332 = dma.done.wait [#allocation3], 256  }
  0x25   :  { %333 = vsyncadd [#allocation3], 4294967040 }
  0x26   :  { %334 = dma.done.wait [#allocation6], 1024  }
  0x27   :  { %335 = vsyncadd [#allocation6], 4294966272  ;;  %v344_v0 = vmov 0.0   ;;  %v394_v1 = vld [vmem:[#allocation2] sm:$0xff]  ;;  %v396_v2 = vld [vmem:[#allocation2 + $0x8] sm:$0xff]  ;;  %vm345_vm0 = vmmov 0  }
  0x28   :  { %225 = vmatprep.subr.bf16.mxu0 %v344_v0  ;;  %46 = vadd.xlane.f32.xlu0 %v394_v1  ;;  %v52_v3 = vmul.f32 %v394_v1, %v394_v1  ;;  %v254_v4 = vld [vmem:[#allocation5] sm:$0xff]   ;;  %v53_v5 = vmul.f32 %v396_v2, %v396_v2  ;;  %v255_v6 = vld [vmem:[#allocation5 + $0x8] sm:$0xff]   ;;  %v256_v7 = vld [vmem:[#allocation5 + $0x10] sm:$0xff]   ;;  %s346_s13 = smov [#allocation7]  }
  0x29   :  { %226 = vmatpush3.bf16.msra.mxu0 %v254_v4  ;;  %v257_v8 = vld [vmem:[#allocation5 + $0x18] sm:$0xff]   ;;  %v258_v9 = vld [vmem:[#allocation5 + $0x20] sm:$0xff]   ;;  %v259_v10 = vld [vmem:[#allocation5 + $0x28] sm:$0xff]   ;;  %241 = vmatprep.mubr.msk.bf16.mxu0 %vm345_vm0, %v344_v0  ;;  %s194_s14 = sshll.u32 %s346_s13, 4  ;;  %s195_s14 = int_to_ptr.vmem [resolvable:$true] %s194_s14 }
  0x2a   :  { %54 = vadd.xlane.f32.xlu1 %v52_v3  ;;  %227 = vmatprep.subr.bf16.mxu0 %v344_v0  ;;  %v260_v11 = vld [vmem:[#allocation5 + $0x30] sm:$0xff]   ;;  %v261_v12 = vld [vmem:[#allocation5 + $0x38] sm:$0xff]   ;;  %s310_s15 = scalar_lea.vmem %s195_s14, 256  ;;  %p315_p3 = scmp.lt.s32.totalorder %s195_s14, %s195_s14 }
  0x2b   :  { %v207_v34 = vld [vmem:[%s428_s2] ss:$0 sm:$0xff]  ;;  %p311_p2 = scmp.ne.s32.totalorder %s195_s14, %s310_s15  ;;  %p316_p4 = scmp.lt.s32.totalorder %s310_s15, %s310_s15 }
  0x2c   :  { %48 = vadd.xlane.f32.xlu0 %v396_v2 }
  0x2d   :  { %228 = vmatpush3.bf16.msra.mxu0 %v255_v6  ;;  %p317_p5 = por %p316_p4, %p315_p3 }
  0x2e   :  { %56 = vadd.xlane.f32.xlu1 %v53_v5  ;;  %229 = vmatprep.subr.bf16.mxu0 %v344_v0 }
  0x2f   :  { %p318_p6 = pnand %p317_p5, %p311_p2 }
  0x31   :  { %230 = vmatpush3.bf16.msra.mxu0 %v256_v7 }
  0x32   :  { %231 = vmatprep.subr.bf16.mxu0 %v344_v0 }
  0x35   :  { %232 = vmatpush3.bf16.msra.mxu0 %v257_v8 }
  0x36   :  { %233 = vmatprep.subr.bf16.mxu0 %v344_v0 }
  0x39   :  { %234 = vmatpush3.bf16.msra.mxu0 %v258_v9 }
  0x3a   :  { %235 = vmatprep.subr.bf16.mxu0 %v344_v0 }
  0x3d   :  { %236 = vmatpush3.bf16.msra.mxu0 %v259_v10 }
  0x3e   :  { %237 = vmatprep.subr.bf16.mxu0 %v344_v0 }
  0x41   :  { %238 = vmatpush3.bf16.msra.mxu0 %v260_v11 }
  0x42   :  { %239 = vmatprep.subr.bf16.mxu0 %v344_v0 }
  0x45   :  { %240 = vmatpush3.bf16.msra.mxu0 %v261_v12 }
  0xb5   :  { %v47_v13 = vpop.xlane.xlu0 %46 }
  0xb6   :  { %v50_v14 = vmul.f32 0.03125, %v47_v13 }
  0xb7   :  { %v55_v15 = vpop.xlane.xlu1 %54 }
  0xb8   :  { %v60_v16 = vmul.f32 %v50_v14, %v50_v14  ;;  %v58_v17 = vmul.f32 0.03125, %v55_v15  ;;  %v68_v28 = vsub.f32 %v394_v1, %v50_v14 }
  0xb9   :  { %v49_v18 = vpop.xlane.xlu0 %48 }
  0xba   :  { %v62_v19 = vsub.f32 %v58_v17, %v60_v16  ;;  %v51_v20 = vmul.f32 0.03125, %v49_v18 }
  0xbb   :  { %v57_v21 = vpop.xlane.xlu1 %56 }
  0xbc   :  { %v64_v22 = vadd.f32 1e-05, %v62_v19  ;;  %v61_v23 = vmul.f32 %v51_v20, %v51_v20  ;;  %v59_v24 = vmul.f32 0.03125, %v57_v21  ;;  %v69_v29 = vsub.f32 %v396_v2, %v51_v20 }
  0xbe   :  { %v63_v25 = vsub.f32 %v59_v24, %v61_v23  ;;  %262 = vrsqrt.f32 %v64_v22 }
  0xc0   :  { %v65_v26 = vadd.f32 1e-05, %v63_v25 }
  0xc2   :  { %264 = vrsqrt.f32 %v65_v26 }
  0xc8   :  { %v263_v27 = vpop.eup %262 }
  0xc9   :  { %v70_v31 = vmul.f32 %v263_v27, %v68_v28 }
  0xcc   :  { %v265_v30 = vpop.eup %264 }
  0xcd   :  { %v71_v32 = vmul.f32 %v265_v30, %v69_v29 }
  0xcf   :  { %v72_v33 = vpack.c.bf16 %v71_v32, %v70_v31 }
  0xd1   :  { %242 = vmatmul.mubr.bf16.vlgmr.msra.gmra.mrb[0].mxu0 %v72_v33 }
 0x1a4   :  { %v178_v35 = vpop.f32.mrb[0].mxu0 }
 0x1a5   :  { %v179_v36 = vadd.f32 %v207_v34, %v178_v35  ;;  %v243_v37 = vpop.f32.mrb[1].mxu0 }
 0x1a6   :  { %v181_v38 = vpop.f32.mrb[2].mxu0 }
 0x1a7   :  { %v185_v39 = vadd.f32 %v179_v36, %v394_v1  ;;  %v182_v40 = vadd.f32 %v207_v34, %v181_v38  ;;  %v244_v41 = vpop.f32.mrb[3].mxu0 }
 0x1a9   :  { %187 = vst [vmem:[#allocation7] sm:$0xff] %v185_v39  ;;  %v186_v42 = vadd.f32 %v182_v40, %v396_v2 }
 0x1ab   :  { %188 = vst [vmem:[#allocation7 + $0x8] sm:$0xff] %v186_v42 }
 0x1ac   :  { %321 = shalt.err (!%p318_p6)
}
 0x1ad   :  { %s322_s17 = scalar_lea.hbm %s429_s3, 256 }
 0x1ae   :  { %p323_p7 = scmp.ne.s32.totalorder %s429_s3, %s322_s17  ;;  %p326_p8 = scmp.lt.u32.totalorder %s322_s17, %s429_s3 }
 0x1b0   :  { %p328_p9 = pnand %p326_p8, %p323_p7 }
 0x1b2   :  { %331 = shalt.err (!%p328_p9)
}
 0x1b3   :  { %200 = dma.vmem_to_hbm [thread:$0]  %s195_s14, 256, %s429_s3, [#allocation4], %s339_s22, %s339_s22, %s340_s23  }
 0x1b4   :  { %336 = dma.done.wait [#allocation4], 256  }
 0x1b5   :  { %337 = vsyncadd [#allocation4], 4294967040 }
 0x1b6   :  { %204 = vsyncpa [#allocation3], 1 }
 0x1b7   :  { %205 = vsyncpa [#allocation6], 1 }
 0x1b8   :  { %206 = vsyncpa [#allocation4], 1 }

</bundles_post_ra>
